<compile_context>
chip_gen: v7x
topology: tpu7x:2x2x1
jax: 0.10.0
libtpu: 0.0.40
codegen_flags: <defaults>
</compile_context>

<pallas_src>
import jax
import jax.numpy as jnp
from jax import lax
from jax.experimental import pallas as pl
from jax.experimental.pallas import tpu as pltpu


def _round_up(x, m):
    return ((x + m - 1) // m) * m


def _make_inpblock_kernel(cin, cout, negative_slope, tile_rows, chunk_rows):
    assert tile_rows % chunk_rows == 0
    n_chunks = tile_rows // chunk_rows

    if n_chunks == 1:
        # Small-tile path: straight-line body, full-block loads/stores.
        def kernel(x_ref, w_ref, o_ref):
            # x_ref: (1, cin, TR, 128), w_ref: (cout, cin) SMEM, o_ref: (1, cout, TR, 128)
            for c in range(cout):
                acc = w_ref[c, 0] * x_ref[0, 0]
                for k in range(1, cin):
                    acc = acc + w_ref[c, k] * x_ref[0, k]
                y = jnp.maximum(acc, negative_slope * acc)   # LeakyReLU(0.2)
                o_ref[0, c] = y.astype(o_ref.dtype)
        return kernel

    # Large-tile path: strip-mine rows with fori_loop to bound vreg live ranges.
    def kernel(x_ref, w_ref, o_ref):
        def chunk_body(r, carry):
            base = pl.multiple_of(r * chunk_rows, chunk_rows)
            for c in range(cout):
                # Re-load each input channel chunk per output channel (vld slots
                # have slack; keeping 3 big slabs live across 8 unrolled channels
                # would spill).
                acc = w_ref[c, 0] * x_ref[0, 0, pl.ds(base, chunk_rows), :]
                for k in range(1, cin):
                    acc = acc + w_ref[c, k] * x_ref[0, k, pl.ds(base, chunk_rows), :]
                y = jnp.maximum(acc, negative_slope * acc)   # LeakyReLU(0.2)
                o_ref[0, c, pl.ds(base, chunk_rows), :] = y.astype(o_ref.dtype)
            return carry

        lax.fori_loop(0, n_chunks, chunk_body, 0)

    return kernel


def inp_block_forward(x_nchw, weight_oi, *, negative_slope=0.2,
                      vmem_budget_bytes=24 * 1024 * 1024):
    """InpBlock forward: 1x1 conv (no bias) + LeakyReLU(0.2).

    x_nchw: (N, 3, H, W) float32.
    weight_oi: (C_out, 3) — PyTorch Conv2d weight (C_out, C_in, 1, 1) squeezed.
    """
    n, cin, h, w = x_nchw.shape
    cout, cin_w = weight_oi.shape
    assert cin_w == cin

    lanes = 128
    itemsize = jnp.dtype(x_nchw.dtype).itemsize
    # NOTE: tuned for 32-bit inputs; bf16 would want 16-row sublane alignment.
    s = h * w
    n_rows = pl.cdiv(s, lanes)
    s_pad = n_rows * lanes

    # Max rows per grid-step tile from a double-buffered (in + out) VMEM budget.
    bytes_per_row_db = 2 * (cin + cout) * lanes * itemsize
    max_tile_rows = min(1024, max(128, (vmem_budget_bytes // bytes_per_row_db) // 128 * 128))

    if n_rows <= 128:
        # Small spatial extent: one full-extent block (always legal), no chunking.
        tile_rows = n_rows
        chunk_rows = n_rows
    else:
        # Aim for ~4 row-steps for pipelining, tiles >= 128 rows, multiple of 128
        # so the in-kernel chunk loop divides evenly; ragged tail handled by the
        # cdiv grid + Pallas edge-block masking.
        tile_rows = min(_round_up(pl.cdiv(n_rows, 4), 128), max_tile_rows)
        chunk_rows = 128

    # NCHW stays; reshapes are free (contiguous).  Pad only to a lane multiple.
    x_flat = x_nchw.reshape(n, cin, s)
    if s_pad != s:
        x_flat = jnp.pad(x_flat, ((0, 0), (0, 0), (0, s_pad - s)))
    x_tiles = x_flat.reshape(n, cin, n_rows, lanes)

    n_row_blocks = pl.cdiv(n_rows, tile_rows)
    grid = (n, n_row_blocks)

    kernel = _make_inpblock_kernel(cin, cout, negative_slope, tile_rows, chunk_rows)

    flops = 2 * (cin + 1) * cout * n * s                 # contraction + leaky
    bytes_accessed = (cin + cout) * n * s * itemsize     # HBM read + write

    out_tiles = pl.pallas_call(
        kernel,
        out_shape=jax.ShapeDtypeStruct((n, cout, n_rows, lanes), x_nchw.dtype),
        grid_spec=pltpu.PrefetchScalarGridSpec(
            num_scalar_prefetch=0,
            grid=grid,
            in_specs=[
                pl.BlockSpec((1, cin, tile_rows, lanes), lambda i, j: (i, 0, j, 0)),
                pl.BlockSpec(memory_space=pltpu.MemorySpace.SMEM),  # (cout, cin) weights
            ],
            out_specs=pl.BlockSpec((1, cout, tile_rows, lanes), lambda i, j: (i, 0, j, 0)),
        ),
        compiler_params=pltpu.CompilerParams(
            dimension_semantics=("parallel", "parallel"),
            vmem_limit_bytes=32 * 1024 * 1024,
        ),
        cost_estimate=pl.CostEstimate(
            flops=flops, transcendentals=0, bytes_accessed=bytes_accessed),
    )(x_tiles, weight_oi)

    out_flat = out_tiles.reshape(n, cout, s_pad)
    if s_pad != s:
        out_flat = out_flat[:, :, :s]
    return out_flat.reshape(n, cout, h, w)


def reference_forward(x_nchw, weight_oi, negative_slope=0.2):
    # Pure-JAX reference: 1x1 conv (no bias) + LeakyReLU(0.2)
    y = jnp.einsum("nchw,oc->nohw", x_nchw, weight_oi,
                   precision=jax.lax.Precision.HIGHEST)
    return jnp.where(y >= 0, y, negative_slope * y)


if __name__ == "__main__":
    key = jax.random.PRNGKey(0)
    kx, kw, kx2 = jax.random.split(key, 3)

    C_IN, C_OUT = 3, 8
    # Deterministic synthetic weights (PyTorch Conv2d weight (C_out, C_in, 1, 1) squeezed).
    weight = jax.random.normal(kw, (C_OUT, C_IN), dtype=jnp.float32) * 0.1

    # Primary small test: (2, 3, 16, 16) -> single full-extent block, pipelined over N.
    N, H, W = 2, 16, 16
    x = jax.random.normal(kx, (N, C_IN, H, W), dtype=jnp.float32)
    out = jax.block_until_ready(inp_block_forward(x, weight))
    ref = reference_forward(x, weight)
    assert out.shape == (N, C_OUT, H, W)
    assert jnp.allclose(out, ref, atol=1e-5, rtol=1e-5), "mismatch vs reference (small)"

    # Secondary test: exercises lane padding (H*W % 128 != 0), the cdiv grid with a
    # partial last row-block, and the in-kernel row-chunk loop (n_rows > 128).
    N2, H2, W2 = 1, 271, 273
    x2 = jax.random.normal(kx2, (N2, C_IN, H2, W2), dtype=jnp.float32)
    out2 = jax.block_until_ready(inp_block_forward(x2, weight))
    ref2 = reference_forward(x2, weight)
    assert out2.shape == (N2, C_OUT, H2, W2)
    assert jnp.allclose(out2, ref2, atol=1e-5, rtol=1e-5), "mismatch vs reference (tiled)"

    print("KERNEL_OK")
</pallas_src>

<mosaic_0001>
module attributes {stable_mosaic.version = 11 : i64} {
  func.func @kernel(%arg0: i32, %arg1: i32, %arg2: memref<1x3x2x128xf32, #tpu.memory_space<vmem>>, %arg3: memref<8x3xf32, #tpu.memory_space<smem>>, %arg4: memref<1x8x2x128xf32, #tpu.memory_space<vmem>>) attributes {dimension_semantics = [#tpu.dimension_semantics<parallel>, #tpu.dimension_semantics<parallel>], iteration_bounds = array<i64: 2, 1>, scalar_prefetch = 0 : i64, scratch_operands = 0 : i64, tpu.core_type = #tpu.core_type<tc>, window_params = [{transform_indices = @transform_0, window_bounds = array<i64: 1, 3, 2, 128>}, {transform_indices = @transform_1, window_bounds = array<i64: 8, 3>}, {transform_indices = @transform_2, window_bounds = array<i64: 1, 8, 2, 128>}]} {
    %c0 = arith.constant 0 : index
    %c0_0 = arith.constant 0 : index
    %0 = memref.load %arg3[%c0, %c0_0] : memref<8x3xf32, #tpu.memory_space<smem>>
    %c0_1 = arith.constant 0 : index
    %c0_2 = arith.constant 0 : index
    %c0_3 = arith.constant 0 : index
    %c0_4 = arith.constant 0 : index
    %1 = vector.load %arg2[%c0_1, %c0_2, %c0_3, %c0_4] : memref<1x3x2x128xf32, #tpu.memory_space<vmem>>, vector<1x1x2x128xf32>
    %2 = vector.shape_cast %1 : vector<1x1x2x128xf32> to vector<2x128xf32>
    %3 = vector.broadcast %0 : f32 to vector<2x128xf32>
    %4 = arith.mulf %3, %2 : vector<2x128xf32>
    %c0_5 = arith.constant 0 : index
    %c1 = arith.constant 1 : index
    %5 = memref.load %arg3[%c0_5, %c1] : memref<8x3xf32, #tpu.memory_space<smem>>
    %c0_6 = arith.constant 0 : index
    %c1_7 = arith.constant 1 : index
    %c0_8 = arith.constant 0 : index
    %c0_9 = arith.constant 0 : index
    %6 = vector.load %arg2[%c0_6, %c1_7, %c0_8, %c0_9] : memref<1x3x2x128xf32, #tpu.memory_space<vmem>>, vector<1x1x2x128xf32>
    %7 = vector.shape_cast %6 : vector<1x1x2x128xf32> to vector<2x128xf32>
    %8 = vector.broadcast %5 : f32 to vector<2x128xf32>
    %9 = arith.mulf %8, %7 : vector<2x128xf32>
    %10 = arith.addf %4, %9 : vector<2x128xf32>
    %c0_10 = arith.constant 0 : index
    %c2 = arith.constant 2 : index
    %11 = memref.load %arg3[%c0_10, %c2] : memref<8x3xf32, #tpu.memory_space<smem>>
    %c0_11 = arith.constant 0 : index
    %c2_12 = arith.constant 2 : index
    %c0_13 = arith.constant 0 : index
    %c0_14 = arith.constant 0 : index
    %12 = vector.load %arg2[%c0_11, %c2_12, %c0_13, %c0_14] : memref<1x3x2x128xf32, #tpu.memory_space<vmem>>, vector<1x1x2x128xf32>
    %13 = vector.shape_cast %12 : vector<1x1x2x128xf32> to vector<2x128xf32>
    %14 = vector.broadcast %11 : f32 to vector<2x128xf32>
    %15 = arith.mulf %14, %13 : vector<2x128xf32>
    %16 = arith.addf %10, %15 : vector<2x128xf32>
    %cst = arith.constant 2.000000e-01 : f32
    %17 = vector.broadcast %cst : f32 to vector<2x128xf32>
    %18 = arith.mulf %17, %16 : vector<2x128xf32>
    %19 = arith.maximumf %16, %18 : vector<2x128xf32>
    %c0_15 = arith.constant 0 : index
    %c0_16 = arith.constant 0 : index
    %c0_17 = arith.constant 0 : index
    %c0_18 = arith.constant 0 : index
    %20 = vector.load %arg4[%c0_15, %c0_16, %c0_17, %c0_18] : memref<1x8x2x128xf32, #tpu.memory_space<vmem>>, vector<1x1x2x128xf32>
    %21 = vector.shape_cast %20 : vector<1x1x2x128xf32> to vector<2x128xf32>
    %22 = vector.shape_cast %19 : vector<2x128xf32> to vector<1x1x2x128xf32>
    tpu.vector_store %arg4[%c0_15, %c0_16, %c0_17, %c0_18], %22 {strides = array<i32>} : memref<1x8x2x128xf32, #tpu.memory_space<vmem>>, vector<1x1x2x128xf32>,
    %c1_19 = arith.constant 1 : index
    %c0_20 = arith.constant 0 : index
    %23 = memref.load %arg3[%c1_19, %c0_20] : memref<8x3xf32, #tpu.memory_space<smem>>
    %c0_21 = arith.constant 0 : index
    %c0_22 = arith.constant 0 : index
    %c0_23 = arith.constant 0 : index
    %c0_24 = arith.constant 0 : index
    %24 = vector.load %arg2[%c0_21, %c0_22, %c0_23, %c0_24] : memref<1x3x2x128xf32, #tpu.memory_space<vmem>>, vector<1x1x2x128xf32>
    %25 = vector.shape_cast %24 : vector<1x1x2x128xf32> to vector<2x128xf32>
    %26 = vector.broadcast %23 : f32 to vector<2x128xf32>
    %27 = arith.mulf %26, %25 : vector<2x128xf32>
    %c1_25 = arith.constant 1 : index
    %c1_26 = arith.constant 1 : index
    %28 = memref.load %arg3[%c1_25, %c1_26] : memref<8x3xf32, #tpu.memory_space<smem>>
    %c0_27 = arith.constant 0 : index
    %c1_28 = arith.constant 1 : index
    %c0_29 = arith.constant 0 : index
    %c0_30 = arith.constant 0 : index
    %29 = vector.load %arg2[%c0_27, %c1_28, %c0_29, %c0_30] : memref<1x3x2x128xf32, #tpu.memory_space<vmem>>, vector<1x1x2x128xf32>
    %30 = vector.shape_cast %29 : vector<1x1x2x128xf32> to vector<2x128xf32>
    %31 = vector.broadcast %28 : f32 to vector<2x128xf32>
    %32 = arith.mulf %31, %30 : vector<2x128xf32>
    %33 = arith.addf %27, %32 : vector<2x128xf32>
    %c1_31 = arith.constant 1 : index
    %c2_32 = arith.constant 2 : index
    %34 = memref.load %arg3[%c1_31, %c2_32] : memref<8x3xf32, #tpu.memory_space<smem>>
    %c0_33 = arith.constant 0 : index
    %c2_34 = arith.constant 2 : index
    %c0_35 = arith.constant 0 : index
    %c0_36 = arith.constant 0 : index
    %35 = vector.load %arg2[%c0_33, %c2_34, %c0_35, %c0_36] : memref<1x3x2x128xf32, #tpu.memory_space<vmem>>, vector<1x1x2x128xf32>
    %36 = vector.shape_cast %35 : vector<1x1x2x128xf32> to vector<2x128xf32>
    %37 = vector.broadcast %34 : f32 to vector<2x128xf32>
    %38 = arith.mulf %37, %36 : vector<2x128xf32>
    %39 = arith.addf %33, %38 : vector<2x128xf32>
    %cst_37 = arith.constant 2.000000e-01 : f32
    %40 = vector.broadcast %cst_37 : f32 to vector<2x128xf32>
    %41 = arith.mulf %40, %39 : vector<2x128xf32>
    %42 = arith.maximumf %39, %41 : vector<2x128xf32>
    %c0_38 = arith.constant 0 : index
    %c1_39 = arith.constant 1 : index
    %c0_40 = arith.constant 0 : index
    %c0_41 = arith.constant 0 : index
    %43 = vector.load %arg4[%c0_38, %c1_39, %c0_40, %c0_41] : memref<1x8x2x128xf32, #tpu.memory_space<vmem>>, vector<1x1x2x128xf32>
    %44 = vector.shape_cast %43 : vector<1x1x2x128xf32> to vector<2x128xf32>
    %45 = vector.shape_cast %42 : vector<2x128xf32> to vector<1x1x2x128xf32>
    tpu.vector_store %arg4[%c0_38, %c1_39, %c0_40, %c0_41], %45 {strides = array<i32>} : memref<1x8x2x128xf32, #tpu.memory_space<vmem>>, vector<1x1x2x128xf32>,
    %c2_42 = arith.constant 2 : index
    %c0_43 = arith.constant 0 : index
    %46 = memref.load %arg3[%c2_42, %c0_43] : memref<8x3xf32, #tpu.memory_space<smem>>
    %c0_44 = arith.constant 0 : index
    %c0_45 = arith.constant 0 : index
    %c0_46 = arith.constant 0 : index
    %c0_47 = arith.constant 0 : index
    %47 = vector.load %arg2[%c0_44, %c0_45, %c0_46, %c0_47] : memref<1x3x2x128xf32, #tpu.memory_space<vmem>>, vector<1x1x2x128xf32>
    %48 = vector.shape_cast %47 : vector<1x1x2x128xf32> to vector<2x128xf32>
    %49 = vector.broadcast %46 : f32 to vector<2x128xf32>
    %50 = arith.mulf %49, %48 : vector<2x128xf32>
    %c2_48 = arith.constant 2 : index
    %c1_49 = arith.constant 1 : index
    %51 = memref.load %arg3[%c2_48, %c1_49] : memref<8x3xf32, #tpu.memory_space<smem>>
    %c0_50 = arith.constant 0 : index
    %c1_51 = arith.constant 1 : index
    %c0_52 = arith.constant 0 : index
    %c0_53 = arith.constant 0 : index
    %52 = vector.load %arg2[%c0_50, %c1_51, %c0_52, %c0_53] : memref<1x3x2x128xf32, #tpu.memory_space<vmem>>, vector<1x1x2x128xf32>
    %53 = vector.shape_cast %52 : vector<1x1x2x128xf32> to vector<2x128xf32>
    %54 = vector.broadcast %51 : f32 to vector<2x128xf32>
    %55 = arith.mulf %54, %53 : vector<2x128xf32>
    %56 = arith.addf %50, %55 : vector<2x128xf32>
    %c2_54 = arith.constant 2 : index
    %c2_55 = arith.constant 2 : index
    %57 = memref.load %arg3[%c2_54, %c2_55] : memref<8x3xf32, #tpu.memory_space<smem>>
    %c0_56 = arith.constant 0 : index
    %c2_57 = arith.constant 2 : index
    %c0_58 = arith.constant 0 : index
    %c0_59 = arith.constant 0 : index
    %58 = vector.load %arg2[%c0_56, %c2_57, %c0_58, %c0_59] : memref<1x3x2x128xf32, #tpu.memory_space<vmem>>, vector<1x1x2x128xf32>
    %59 = vector.shape_cast %58 : vector<1x1x2x128xf32> to vector<2x128xf32>
    %60 = vector.broadcast %57 : f32 to vector<2x128xf32>
    %61 = arith.mulf %60, %59 : vector<2x128xf32>
    %62 = arith.addf %56, %61 : vector<2x128xf32>
    %cst_60 = arith.constant 2.000000e-01 : f32
    %63 = vector.broadcast %cst_60 : f32 to vector<2x128xf32>
    %64 = arith.mulf %63, %62 : vector<2x128xf32>
    %65 = arith.maximumf %62, %64 : vector<2x128xf32>
    %c0_61 = arith.constant 0 : index
    %c2_62 = arith.constant 2 : index
    %c0_63 = arith.constant 0 : index
    %c0_64 = arith.constant 0 : index
    %66 = vector.load %arg4[%c0_61, %c2_62, %c0_63, %c0_64] : memref<1x8x2x128xf32, #tpu.memory_space<vmem>>, vector<1x1x2x128xf32>
    %67 = vector.shape_cast %66 : vector<1x1x2x128xf32> to vector<2x128xf32>
    %68 = vector.shape_cast %65 : vector<2x128xf32> to vector<1x1x2x128xf32>
    tpu.vector_store %arg4[%c0_61, %c2_62, %c0_63, %c0_64], %68 {strides = array<i32>} : memref<1x8x2x128xf32, #tpu.memory_space<vmem>>, vector<1x1x2x128xf32>,
    %c3 = arith.constant 3 : index
    %c0_65 = arith.constant 0 : index
    %69 = memref.load %arg3[%c3, %c0_65] : memref<8x3xf32, #tpu.memory_space<smem>>
    %c0_66 = arith.constant 0 : index
    %c0_67 = arith.constant 0 : index
    %c0_68 = arith.constant 0 : index
    %c0_69 = arith.constant 0 : index
    %70 = vector.load %arg2[%c0_66, %c0_67, %c0_68, %c0_69] : memref<1x3x2x128xf32, #tpu.memory_space<vmem>>, vector<1x1x2x128xf32>
    %71 = vector.shape_cast %70 : vector<1x1x2x128xf32> to vector<2x128xf32>
    %72 = vector.broadcast %69 : f32 to vector<2x128xf32>
    %73 = arith.mulf %72, %71 : vector<2x128xf32>
    %c3_70 = arith.constant 3 : index
    %c1_71 = arith.constant 1 : index
    %74 = memref.load %arg3[%c3_70, %c1_71] : memref<8x3xf32, #tpu.memory_space<smem>>
    %c0_72 = arith.constant 0 : index
    %c1_73 = arith.constant 1 : index
    %c0_74 = arith.constant 0 : index
    %c0_75 = arith.constant 0 : index
    %75 = vector.load %arg2[%c0_72, %c1_73, %c0_74, %c0_75] : memref<1x3x2x128xf32, #tpu.memory_space<vmem>>, vector<1x1x2x128xf32>
    %76 = vector.shape_cast %75 : vector<1x1x2x128xf32> to vector<2x128xf32>
    %77 = vector.broadcast %74 : f32 to vector<2x128xf32>
    %78 = arith.mulf %77, %76 : vector<2x128xf32>
    %79 = arith.addf %73, %78 : vector<2x128xf32>
    %c3_76 = arith.constant 3 : index
    %c2_77 = arith.constant 2 : index
    %80 = memref.load %arg3[%c3_76, %c2_77] : memref<8x3xf32, #tpu.memory_space<smem>>
    %c0_78 = arith.constant 0 : index
    %c2_79 = arith.constant 2 : index
    %c0_80 = arith.constant 0 : index
    %c0_81 = arith.constant 0 : index
    %81 = vector.load %arg2[%c0_78, %c2_79, %c0_80, %c0_81] : memref<1x3x2x128xf32, #tpu.memory_space<vmem>>, vector<1x1x2x128xf32>
    %82 = vector.shape_cast %81 : vector<1x1x2x128xf32> to vector<2x128xf32>
    %83 = vector.broadcast %80 : f32 to vector<2x128xf32>
    %84 = arith.mulf %83, %82 : vector<2x128xf32>
    %85 = arith.addf %79, %84 : vector<2x128xf32>
    %cst_82 = arith.constant 2.000000e-01 : f32
    %86 = vector.broadcast %cst_82 : f32 to vector<2x128xf32>
    %87 = arith.mulf %86, %85 : vector<2x128xf32>
    %88 = arith.maximumf %85, %87 : vector<2x128xf32>
    %c0_83 = arith.constant 0 : index
    %c3_84 = arith.constant 3 : index
    %c0_85 = arith.constant 0 : index
    %c0_86 = arith.constant 0 : index
    %89 = vector.load %arg4[%c0_83, %c3_84, %c0_85, %c0_86] : memref<1x8x2x128xf32, #tpu.memory_space<vmem>>, vector<1x1x2x128xf32>
    %90 = vector.shape_cast %89 : vector<1x1x2x128xf32> to vector<2x128xf32>
    %91 = vector.shape_cast %88 : vector<2x128xf32> to vector<1x1x2x128xf32>
    tpu.vector_store %arg4[%c0_83, %c3_84, %c0_85, %c0_86], %91 {strides = array<i32>} : memref<1x8x2x128xf32, #tpu.memory_space<vmem>>, vector<1x1x2x128xf32>,
    %c4 = arith.constant 4 : index
    %c0_87 = arith.constant 0 : index
    %92 = memref.load %arg3[%c4, %c0_87] : memref<8x3xf32, #tpu.memory_space<smem>>
    %c0_88 = arith.constant 0 : index
    %c0_89 = arith.constant 0 : index
    %c0_90 = arith.constant 0 : index
    %c0_91 = arith.constant 0 : index
    %93 = vector.load %arg2[%c0_88, %c0_89, %c0_90, %c0_91] : memref<1x3x2x128xf32, #tpu.memory_space<vmem>>, vector<1x1x2x128xf32>
    %94 = vector.shape_cast %93 : vector<1x1x2x128xf32> to vector<2x128xf32>
    %95 = vector.broadcast %92 : f32 to vector<2x128xf32>
    %96 = arith.mulf %95, %94 : vector<2x128xf32>
    %c4_92 = arith.constant 4 : index
    %c1_93 = arith.constant 1 : index
    %97 = memref.load %arg3[%c4_92, %c1_93] : memref<8x3xf32, #tpu.memory_space<smem>>
    %c0_94 = arith.constant 0 : index
    %c1_95 = arith.constant 1 : index
    %c0_96 = arith.constant 0 : index
    %c0_97 = arith.constant 0 : index
    %98 = vector.load %arg2[%c0_94, %c1_95, %c0_96, %c0_97] : memref<1x3x2x128xf32, #tpu.memory_space<vmem>>, vector<1x1x2x128xf32>
    %99 = vector.shape_cast %98 : vector<1x1x2x128xf32> to vector<2x128xf32>
    %100 = vector.broadcast %97 : f32 to vector<2x128xf32>
    %101 = arith.mulf %100, %99 : vector<2x128xf32>
    %102 = arith.addf %96, %101 : vector<2x128xf32>
    %c4_98 = arith.constant 4 : index
    %c2_99 = arith.constant 2 : index
    %103 = memref.load %arg3[%c4_98, %c2_99] : memref<8x3xf32, #tpu.memory_space<smem>>
    %c0_100 = arith.constant 0 : index
    %c2_101 = arith.constant 2 : index
    %c0_102 = arith.constant 0 : index
    %c0_103 = arith.constant 0 : index
    %104 = vector.load %arg2[%c0_100, %c2_101, %c0_102, %c0_103] : memref<1x3x2x128xf32, #tpu.memory_space<vmem>>, vector<1x1x2x128xf32>
    %105 = vector.shape_cast %104 : vector<1x1x2x128xf32> to vector<2x128xf32>
    %106 = vector.broadcast %103 : f32 to vector<2x128xf32>
    %107 = arith.mulf %106, %105 : vector<2x128xf32>
    %108 = arith.addf %102, %107 : vector<2x128xf32>
    %cst_104 = arith.constant 2.000000e-01 : f32
    %109 = vector.broadcast %cst_104 : f32 to vector<2x128xf32>
    %110 = arith.mulf %109, %108 : vector<2x128xf32>
    %111 = arith.maximumf %108, %110 : vector<2x128xf32>
    %c0_105 = arith.constant 0 : index
    %c4_106 = arith.constant 4 : index
    %c0_107 = arith.constant 0 : index
    %c0_108 = arith.constant 0 : index
    %112 = vector.load %arg4[%c0_105, %c4_106, %c0_107, %c0_108] : memref<1x8x2x128xf32, #tpu.memory_space<vmem>>, vector<1x1x2x128xf32>
    %113 = vector.shape_cast %112 : vector<1x1x2x128xf32> to vector<2x128xf32>
    %114 = vector.shape_cast %111 : vector<2x128xf32> to vector<1x1x2x128xf32>
    tpu.vector_store %arg4[%c0_105, %c4_106, %c0_107, %c0_108], %114 {strides = array<i32>} : memref<1x8x2x128xf32, #tpu.memory_space<vmem>>, vector<1x1x2x128xf32>,
    %c5 = arith.constant 5 : index
    %c0_109 = arith.constant 0 : index
    %115 = memref.load %arg3[%c5, %c0_109] : memref<8x3xf32, #tpu.memory_space<smem>>
    %c0_110 = arith.constant 0 : index
    %c0_111 = arith.constant 0 : index
    %c0_112 = arith.constant 0 : index
    %c0_113 = arith.constant 0 : index
    %116 = vector.load %arg2[%c0_110, %c0_111, %c0_112, %c0_113] : memref<1x3x2x128xf32, #tpu.memory_space<vmem>>, vector<1x1x2x128xf32>
    %117 = vector.shape_cast %116 : vector<1x1x2x128xf32> to vector<2x128xf32>
    %118 = vector.broadcast %115 : f32 to vector<2x128xf32>
    %119 = arith.mulf %118, %117 : vector<2x128xf32>
    %c5_114 = arith.constant 5 : index
    %c1_115 = arith.constant 1 : index
    %120 = memref.load %arg3[%c5_114, %c1_115] : memref<8x3xf32, #tpu.memory_space<smem>>
    %c0_116 = arith.constant 0 : index
    %c1_117 = arith.constant 1 : index
    %c0_118 = arith.constant 0 : index
    %c0_119 = arith.constant 0 : index
    %121 = vector.load %arg2[%c0_116, %c1_117, %c0_118, %c0_119] : memref<1x3x2x128xf32, #tpu.memory_space<vmem>>, vector<1x1x2x128xf32>
    %122 = vector.shape_cast %121 : vector<1x1x2x128xf32> to vector<2x128xf32>
    %123 = vector.broadcast %120 : f32 to vector<2x128xf32>
    %124 = arith.mulf %123, %122 : vector<2x128xf32>
    %125 = arith.addf %119, %124 : vector<2x128xf32>
    %c5_120 = arith.constant 5 : index
    %c2_121 = arith.constant 2 : index
    %126 = memref.load %arg3[%c5_120, %c2_121] : memref<8x3xf32, #tpu.memory_space<smem>>
    %c0_122 = arith.constant 0 : index
    %c2_123 = arith.constant 2 : index
    %c0_124 = arith.constant 0 : index
    %c0_125 = arith.constant 0 : index
    %127 = vector.load %arg2[%c0_122, %c2_123, %c0_124, %c0_125] : memref<1x3x2x128xf32, #tpu.memory_space<vmem>>, vector<1x1x2x128xf32>
    %128 = vector.shape_cast %127 : vector<1x1x2x128xf32> to vector<2x128xf32>
    %129 = vector.broadcast %126 : f32 to vector<2x128xf32>
    %130 = arith.mulf %129, %128 : vector<2x128xf32>
    %131 = arith.addf %125, %130 : vector<2x128xf32>
    %cst_126 = arith.constant 2.000000e-01 : f32
    %132 = vector.broadcast %cst_126 : f32 to vector<2x128xf32>
    %133 = arith.mulf %132, %131 : vector<2x128xf32>
    %134 = arith.maximumf %131, %133 : vector<2x128xf32>
    %c0_127 = arith.constant 0 : index
    %c5_128 = arith.constant 5 : index
    %c0_129 = arith.constant 0 : index
    %c0_130 = arith.constant 0 : index
    %135 = vector.load %arg4[%c0_127, %c5_128, %c0_129, %c0_130] : memref<1x8x2x128xf32, #tpu.memory_space<vmem>>, vector<1x1x2x128xf32>
    %136 = vector.shape_cast %135 : vector<1x1x2x128xf32> to vector<2x128xf32>
    %137 = vector.shape_cast %134 : vector<2x128xf32> to vector<1x1x2x128xf32>
    tpu.vector_store %arg4[%c0_127, %c5_128, %c0_129, %c0_130], %137 {strides = array<i32>} : memref<1x8x2x128xf32, #tpu.memory_space<vmem>>, vector<1x1x2x128xf32>,
    %c6 = arith.constant 6 : index
    %c0_131 = arith.constant 0 : index
    %138 = memref.load %arg3[%c6, %c0_131] : memref<8x3xf32, #tpu.memory_space<smem>>
    %c0_132 = arith.constant 0 : index
    %c0_133 = arith.constant 0 : index
    %c0_134 = arith.constant 0 : index
    %c0_135 = arith.constant 0 : index
    %139 = vector.load %arg2[%c0_132, %c0_133, %c0_134, %c0_135] : memref<1x3x2x128xf32, #tpu.memory_space<vmem>>, vector<1x1x2x128xf32>
    %140 = vector.shape_cast %139 : vector<1x1x2x128xf32> to vector<2x128xf32>
    %141 = vector.broadcast %138 : f32 to vector<2x128xf32>
    %142 = arith.mulf %141, %140 : vector<2x128xf32>
    %c6_136 = arith.constant 6 : index
    %c1_137 = arith.constant 1 : index
    %143 = memref.load %arg3[%c6_136, %c1_137] : memref<8x3xf32, #tpu.memory_space<smem>>
    %c0_138 = arith.constant 0 : index
    %c1_139 = arith.constant 1 : index
    %c0_140 = arith.constant 0 : index
    %c0_141 = arith.constant 0 : index
    %144 = vector.load %arg2[%c0_138, %c1_139, %c0_140, %c0_141] : memref<1x3x2x128xf32, #tpu.memory_space<vmem>>, vector<1x1x2x128xf32>
    %145 = vector.shape_cast %144 : vector<1x1x2x128xf32> to vector<2x128xf32>
    %146 = vector.broadcast %143 : f32 to vector<2x128xf32>
    %147 = arith.mulf %146, %145 : vector<2x128xf32>
    %148 = arith.addf %142, %147 : vector<2x128xf32>
    %c6_142 = arith.constant 6 : index
    %c2_143 = arith.constant 2 : index
    %149 = memref.load %arg3[%c6_142, %c2_143] : memref<8x3xf32, #tpu.memory_space<smem>>
    %c0_144 = arith.constant 0 : index
    %c2_145 = arith.constant 2 : index
    %c0_146 = arith.constant 0 : index
    %c0_147 = arith.constant 0 : index
    %150 = vector.load %arg2[%c0_144, %c2_145, %c0_146, %c0_147] : memref<1x3x2x128xf32, #tpu.memory_space<vmem>>, vector<1x1x2x128xf32>
    %151 = vector.shape_cast %150 : vector<1x1x2x128xf32> to vector<2x128xf32>
    %152 = vector.broadcast %149 : f32 to vector<2x128xf32>
    %153 = arith.mulf %152, %151 : vector<2x128xf32>
    %154 = arith.addf %148, %153 : vector<2x128xf32>
    %cst_148 = arith.constant 2.000000e-01 : f32
    %155 = vector.broadcast %cst_148 : f32 to vector<2x128xf32>
    %156 = arith.mulf %155, %154 : vector<2x128xf32>
    %157 = arith.maximumf %154, %156 : vector<2x128xf32>
    %c0_149 = arith.constant 0 : index
    %c6_150 = arith.constant 6 : index
    %c0_151 = arith.constant 0 : index
    %c0_152 = arith.constant 0 : index
    %158 = vector.load %arg4[%c0_149, %c6_150, %c0_151, %c0_152] : memref<1x8x2x128xf32, #tpu.memory_space<vmem>>, vector<1x1x2x128xf32>
    %159 = vector.shape_cast %158 : vector<1x1x2x128xf32> to vector<2x128xf32>
    %160 = vector.shape_cast %157 : vector<2x128xf32> to vector<1x1x2x128xf32>
    tpu.vector_store %arg4[%c0_149, %c6_150, %c0_151, %c0_152], %160 {strides = array<i32>} : memref<1x8x2x128xf32, #tpu.memory_space<vmem>>, vector<1x1x2x128xf32>,
    %c7 = arith.constant 7 : index
    %c0_153 = arith.constant 0 : index
    %161 = memref.load %arg3[%c7, %c0_153] : memref<8x3xf32, #tpu.memory_space<smem>>
    %c0_154 = arith.constant 0 : index
    %c0_155 = arith.constant 0 : index
    %c0_156 = arith.constant 0 : index
    %c0_157 = arith.constant 0 : index
    %162 = vector.load %arg2[%c0_154, %c0_155, %c0_156, %c0_157] : memref<1x3x2x128xf32, #tpu.memory_space<vmem>>, vector<1x1x2x128xf32>
    %163 = vector.shape_cast %162 : vector<1x1x2x128xf32> to vector<2x128xf32>
    %164 = vector.broadcast %161 : f32 to vector<2x128xf32>
    %165 = arith.mulf %164, %163 : vector<2x128xf32>
    %c7_158 = arith.constant 7 : index
    %c1_159 = arith.constant 1 : index
    %166 = memref.load %arg3[%c7_158, %c1_159] : memref<8x3xf32, #tpu.memory_space<smem>>
    %c0_160 = arith.constant 0 : index
    %c1_161 = arith.constant 1 : index
    %c0_162 = arith.constant 0 : index
    %c0_163 = arith.constant 0 : index
    %167 = vector.load %arg2[%c0_160, %c1_161, %c0_162, %c0_163] : memref<1x3x2x128xf32, #tpu.memory_space<vmem>>, vector<1x1x2x128xf32>
    %168 = vector.shape_cast %167 : vector<1x1x2x128xf32> to vector<2x128xf32>
    %169 = vector.broadcast %166 : f32 to vector<2x128xf32>
    %170 = arith.mulf %169, %168 : vector<2x128xf32>
    %171 = arith.addf %165, %170 : vector<2x128xf32>
    %c7_164 = arith.constant 7 : index
    %c2_165 = arith.constant 2 : index
    %172 = memref.load %arg3[%c7_164, %c2_165] : memref<8x3xf32, #tpu.memory_space<smem>>
    %c0_166 = arith.constant 0 : index
    %c2_167 = arith.constant 2 : index
    %c0_168 = arith.constant 0 : index
    %c0_169 = arith.constant 0 : index
    %173 = vector.load %arg2[%c0_166, %c2_167, %c0_168, %c0_169] : memref<1x3x2x128xf32, #tpu.memory_space<vmem>>, vector<1x1x2x128xf32>
    %174 = vector.shape_cast %173 : vector<1x1x2x128xf32> to vector<2x128xf32>
    %175 = vector.broadcast %172 : f32 to vector<2x128xf32>
    %176 = arith.mulf %175, %174 : vector<2x128xf32>
    %177 = arith.addf %171, %176 : vector<2x128xf32>
    %cst_170 = arith.constant 2.000000e-01 : f32
    %178 = vector.broadcast %cst_170 : f32 to vector<2x128xf32>
    %179 = arith.mulf %178, %177 : vector<2x128xf32>
    %180 = arith.maximumf %177, %179 : vector<2x128xf32>
    %c0_171 = arith.constant 0 : index
    %c7_172 = arith.constant 7 : index
    %c0_173 = arith.constant 0 : index
    %c0_174 = arith.constant 0 : index
    %181 = vector.load %arg4[%c0_171, %c7_172, %c0_173, %c0_174] : memref<1x8x2x128xf32, #tpu.memory_space<vmem>>, vector<1x1x2x128xf32>
    %182 = vector.shape_cast %181 : vector<1x1x2x128xf32> to vector<2x128xf32>
    %183 = vector.shape_cast %180 : vector<2x128xf32> to vector<1x1x2x128xf32>
    tpu.vector_store %arg4[%c0_171, %c7_172, %c0_173, %c0_174], %183 {strides = array<i32>} : memref<1x8x2x128xf32, #tpu.memory_space<vmem>>, vector<1x1x2x128xf32>,
    return
  }
  func.func @transform_0(%arg0: i32, %arg1: i32) -> (i32, i32, i32, i32) {
    %c0_i32 = arith.constant 0 : i32
    %c0_i32_0 = arith.constant 0 : i32
    %c0_i32_1 = arith.constant 0 : i32
    return %arg0, %c0_i32, %arg1, %c0_i32_0 : i32, i32, i32, i32
  }
  func.func @transform_1(%arg0: i32, %arg1: i32) -> (i32, i32) {
    %c0_i32 = arith.constant 0 : i32
    %c0_i32_0 = arith.constant 0 : i32
    %c0_i32_1 = arith.constant 0 : i32
    return %c0_i32, %c0_i32_0 : i32, i32
  }
  func.func @transform_2(%arg0: i32, %arg1: i32) -> (i32, i32, i32, i32) {
    %c0_i32 = arith.constant 0 : i32
    %c0_i32_0 = arith.constant 0 : i32
    %c0_i32_1 = arith.constant 0 : i32
    return %arg0, %c0_i32, %arg1, %c0_i32_0 : i32, i32, i32, i32
  }
}

</mosaic_0001>

<bundles_post_ra>
// kernel: tpu_custom_call.1
= control target key start
LH: loop header
LB: loop body
LE: loop exit
PB: predicated region body
PF: predicated region fallthrough
CT: control target
= control target key end

     0   :  { %7 = vsyncpa [#allocation4], 0  ;;  %s910_s0 = inlined_call_operand.vmem [shape: f32[2,3,2,128], index: 0, kind: input, shape index: {}]   ;;  %s911_s1 = inlined_call_operand.vmem [shape: f32[8,3], index: 1, kind: input, shape index: {}]   ;;  %s912_s2 = inlined_call_operand.hbm [shape: f32[2,8,2,128], index: 2, kind: output, shape index: {}]  }
   0x1   :  { %8 = vsyncpa [#allocation3], 0 }
   0x2   :  { %10 = vsyncpa [#allocation3 + $0x1], 0  ;;  %s679_s9 = smov 0   ;;  %s681_s10 = smov 0  }
   0x3   :  { %s683_s11 = smov 0   ;;  %s685_s12 = smov 0  }
   0x4   :  { %s687_s13 = smov 0   ;;  %s689_s14 = smov 0  }
   0x5 LB: > { %s431_s15 = sadd.s32 4294967295, %s658_s14   ;;  %s432_s16 = sadd.s32 4294967294, %s658_s14   ;;  %s658_s14 = sphi %s689_s14, %s16_s14   ;;  %s654_s13 = sphi %s687_s13, %s921_s13   ;;  %s650_s12 = sphi %s685_s12, %s920_s12   ;;  %s646_s11 = sphi %s683_s11, %s919_s11   ;;  %s642_s10 = sphi %s681_s10, %s918_s10   ;;  %s638_s9 = sphi %s679_s9, %s917_s9  }
   0x6   : > { %s28_s17 = sadd.s32 1, %s654_s13  ;;  %s86_s18 = sadd.s32 1, %s646_s11 }
   0x7   : > { %p30_p0 = scmp.ge.s32.totalorder %s28_s17, 2  ;;  %p96_p1 = scmp.ne.s32.totalorder %s646_s11, %s642_s10 }
   0x8   : > { %p97_p2 = scmp.eq.s32.totalorder %s431_s15, 1  ;;  %p102_p3 = scmp.ne.s32.totalorder %s642_s10, %s638_s9 }
   0x9   : > { %s923_s17 = smov (%p30_p0, %s28_s17), 0  ;;  %p103_p5 = scmp.eq.s32.totalorder %s432_s16, 1 }
   0xa   : > { %p719_p4 = por %p97_p2, %p96_p1  ;;  %s81_s20 = ssub.s32 %s654_s13, %s923_s17 }
   0xb   : > { %p433_p6 = scmp.ge.s32.totalorder %s658_s14, 1  ;;  %p84_p7 = scmp.eq.s32.totalorder %s81_s20, 0 }
   0xc   : > { %p726_p8 = por %p103_p5, %p102_p3  ;;  %p110_p9 = scmp.lt.s32.totalorder %s658_s14, 3 }
   0xd   : > { %s732_s22 = scalar_select %p84_p7, %s646_s11, %s86_s18  }
   0xe   : > { %p734_p10 = pnand %p433_p6, %p110_p9  ;;  %p738_p11 = scmp.eq.s32.totalorder %s431_s15, 0 }
   0xf   : > { %s123_s27 = sshll.u32 %s911_s1, 4  ;;  %s124_s27 = int_to_ptr.vmem [resolvable:$true] %s123_s27 }
  0x10   : > { %p499_p12 = pneg %p734_p10  ;;  %s561_s28 = scalar_lea.vmem %s124_s27, 128 }
  0x11   : > { %p562_p0 = scmp.ne.s32.totalorder %s124_s27, %s561_s28  ;;  %p569_p5 = scmp.lt.s32.totalorder %s124_s27, %s124_s27 }
  0x12   : > { %p500_p13 = pnand %p738_p11, %p499_p12  ;;  %p570_p6 = scmp.lt.s32.totalorder %s561_s28, %s561_s28 }
  0x14   : > { %p563_p1 = pneg %p500_p13  ;;  %p571_p7 = por %p570_p6, %p569_p5 }
  0x16   : > { %p564_p2 = pnand %p563_p1, %p562_p0 }
  0x18   : > { %p565_p3 = pneg %p564_p2 }
  0x1a   : > { %p572_p9 = pnand %p571_p7, %p565_p3 }
  0x1c   : > { %575 = shalt.err (!%p572_p9)
}
  0x1d   : > { %s660_s29 = smov [#allocation2]   ;;  %147 = sbr.rel (%p734_p10) target bundleno = 91 (0x5b), region = 28 }
  0x1e   : > { %502 = dma.vmem_to_smem (!%p500_p13), %s124_s27, 128, %s660_s29, [#allocation4]  }
  0x24   : > { %629 = dma.done.wait (%p738_p11), [#allocation4], 128  }
  0x25   : > { %631 = vsyncadd (%p738_p11), [#allocation4], 4294967168 }
  0x26   : > { %153 = sfence }
  0x27   : > { %p173_p12 = scmp.lt.s32.totalorder %s650_s12, 1  ;;  %s181_s30 = sld [smem:[#allocation2]] }
  0x28   : > { %s440_s3 = sld [smem:[#allocation2 + $0x1]]  ;;  %s442_s5 = sld [smem:[#allocation2 + $0x2]] }
  0x29   : > { %s174_s4 = scalar_select %p173_p12, %s650_s12, 1 }
  0x2a   : > { %s170_s7 = sand.u32 1, %s642_s10   ;;  %s444_s8 = sld [smem:[#allocation2 + $0x80]] }
  0x2b   : > { %s492_s6 = smul.u32 6, %s174_s4  ;;  %s445_s20 = sld [smem:[#allocation2 + $0x81]] }
  0x2c   : > { %s768_s23 = sshll.u32 %s170_s7, 4  ;;  %s447_s24 = sld [smem:[#allocation2 + $0x82]] }
  0x2d   : > { %s761_s18 = scalar_lea.vmem %s910_s0, %s492_s6  ;;  %v183_v0 = vstv %s181_s30  ;;  %s450_s25 = sld [smem:[#allocation2 + $0x100]] }
  0x2e   : > { %v182_v1 = vld [vmem:[%s761_s18] sm:$0x3]  ;;  %v441_v2 = vld [vmem:[%s761_s18 + $0x2] sm:$0x3]  ;;  %v188_v3 = vstv %s440_s3  ;;  %v443_v4 = vld [vmem:[%s761_s18 + $0x4] sm:$0x3] }
  0x2f   : > { %v184_v5 = vmul.f32 %v183_v0, %v182_v1  ;;  %v189_v6 = vmul.f32 %v441_v2, %v188_v3  ;;  %v194_v7 = vstv %s442_s5  ;;  %v201_v8 = vld [vmem:[%s761_s18] sm:$0x3]  ;;  %v446_v11 = vld [vmem:[%s761_s18 + $0x2] sm:$0x3]  ;;  %s772_s26 = sld [smem:[#allocation2 + $0x101]]  ;;  %s774_s27 = sld [smem:[#allocation2 + $0x102]] }
  0x30   : > { %v195_v10 = vmul.f32 %v443_v4, %v194_v7  ;;  %v202_v12 = vstv %s444_s8  ;;  %s776_s28 = sld [smem:[#allocation2 + $0x180]]  ;;  %v448_v16 = vld [vmem:[%s761_s18 + $0x4] sm:$0x3]  ;;  %s779_s29 = sld [smem:[#allocation2 + $0x181]]  ;;  %v219_v18 = vld [vmem:[%s761_s18] sm:$0x3] }
  0x31   : > { %v190_v9 = vadd.f32 %v189_v6, %v184_v5  ;;  %v203_v14 = vmul.f32 %v202_v12, %v201_v8  ;;  %v206_v15 = vstv %s445_s20  ;;  %s781_s30 = sld [smem:[#allocation2 + $0x182]]  ;;  %v452_v19 = vld [vmem:[%s761_s18 + $0x2] sm:$0x3]  ;;  %s785_s3 = sld [smem:[#allocation2 + $0x200]]  ;;  %v454_v22 = vld [vmem:[%s761_s18 + $0x4] sm:$0x3] }
  0x32   : > { %v207_v17 = vmul.f32 %v446_v11, %v206_v15  ;;  %v211_v21 = vstv %s447_s24  ;;  %s788_s4 = sld [smem:[#allocation2 + $0x201]]  ;;  %v237_v26 = vld [vmem:[%s761_s18] sm:$0x3]  ;;  %s791_s5 = sld [smem:[#allocation2 + $0x202]]  ;;  %v458_v31 = vld [vmem:[%s761_s18 + $0x2] sm:$0x3] }
  0x33   : > { %v196_v13 = vadd.f32 %v195_v10, %v190_v9  ;;  %v212_v24 = vmul.f32 %v448_v16, %v211_v21  ;;  %v220_v25 = vstv %s450_s25  ;;  %s793_s6 = sld [smem:[#allocation2 + $0x280]]  ;;  %v460_v32 = vld [vmem:[%s761_s18 + $0x4] sm:$0x3]  ;;  %s799_s8 = sld [smem:[#allocation2 + $0x281]]  ;;  %v255_v40 = vld [vmem:[%s761_s18] sm:$0x3] }
  0x34   : > { %v208_v23 = vadd.f32 %v207_v17, %v203_v14  ;;  %v221_v28 = vmul.f32 %v220_v25, %v219_v18  ;;  %s802_s15 = sld [smem:[#allocation2 + $0x282]]  ;;  %s804_s16 = sld [smem:[#allocation2 + $0x300]]  ;;  %v464_v41 = vld [vmem:[%s761_s18 + $0x2] sm:$0x3]  ;;  %v466_v46 = vld [vmem:[%s761_s18 + $0x4] sm:$0x3] }
  0x35   : > { %v197_v20 = vmul.f32 0.2, %v196_v13  ;;  %v224_v29 = vstv %s772_s26  ;;  %v229_v30 = vstv %s774_s27  ;;  %s807_s20 = scalar_lea.vmem [#allocation5], %s768_s23  ;;  %s814_s24 = sld [smem:[#allocation2 + $0x301]]  ;;  %v273_v49 = vld [vmem:[%s761_s18] sm:$0x3] }
  0x36   : > { %v213_v33 = vadd.f32 %v212_v24, %v208_v23  ;;  %v225_v34 = vmul.f32 %v452_v19, %v224_v29  ;;  %v230_v35 = vmul.f32 %v454_v22, %v229_v30  ;;  %v238_v36 = vstv %s776_s28  ;;  %s817_s23 = sld [smem:[#allocation2 + $0x302]]  ;;  %s822_s25 = sld [smem:[#allocation2 + $0x380]]  ;;  %v470_v54 = vld [vmem:[%s761_s18 + $0x2] sm:$0x3]  ;;  %v472_v55 = vld [vmem:[%s761_s18 + $0x4] sm:$0x3] }
  0x37   : > { %v198_v27 = vmax.f32 %v196_v13, %v197_v20  ;;  %v239_v37 = vmul.f32 %v238_v36, %v237_v26  ;;  %v242_v38 = vstv %s779_s29  ;;  %v247_v39 = vstv %s781_s30  ;;  %s824_s26 = sld [smem:[#allocation2 + $0x381]]  ;;  %s828_s27 = sld [smem:[#allocation2 + $0x382]]  ;;  %v291_v60 = vld [vmem:[%s761_s18] sm:$0x3]  ;;  %v476_v5 = vld [vmem:[%s761_s18 + $0x2] sm:$0x3] }
  0x38   : > { %v214_v42 = vmul.f32 0.2, %v213_v33  ;;  %v226_v43 = vadd.f32 %v225_v34, %v221_v28  ;;  %v243_v44 = vmul.f32 %v458_v31, %v242_v38  ;;  %v248_v45 = vmul.f32 %v460_v32, %v247_v39  ;;  %v478_v6 = vld [vmem:[%s761_s18 + $0x4] sm:$0x3]  ;;  %v309_v11 = vld [vmem:[%s761_s18] sm:$0x3] }
  0x39   : > { %199 = vst [vmem:[%s807_s20] sm:$0x3] %v198_v27  ;;  %v256_v47 = vstv %s785_s3  ;;  %v260_v48 = vstv %s788_s4  ;;  %v265_v57 = vstv %s791_s5  ;;  %s491_s28 = sshll.u32 %s650_s12, 8  ;;  %s864_s4 = scalar_lea.sflag [#allocation3], %s170_s7 }
  0x3a   : > { %v215_v50 = vmax.f32 %v213_v33, %v214_v42  ;;  %v231_v51 = vadd.f32 %v230_v35, %v226_v43  ;;  %v244_v52 = vadd.f32 %v243_v44, %v239_v37  ;;  %v257_v53 = vmul.f32 %v256_v47, %v255_v40  ;;  %v482_v16 = vld [vmem:[%s761_s18 + $0x2] sm:$0x3]  ;;  %v484_v21 = vld [vmem:[%s761_s18 + $0x4] sm:$0x3]  ;;  %s341_s18 = sshll.u32 %s807_s20, 4  ;;  %s859_s3 = scalar_lea.hbm %s912_s2, %s491_s28  ;;  %s853_s18 = int_to_ptr.vmem [resolvable:$true] %s341_s18 }
  0x3b   : > { %v261_v56 = vmul.f32 %v464_v41, %v260_v48  ;;  %v274_v58 = vstv %s793_s6  ;;  %v278_v59 = vstv %s799_s8  ;;  %v266_v63 = vmul.f32 %v466_v46, %v265_v57  ;;  %s576_s5 = scalar_lea.vmem %s853_s18, 256  ;;  %s661_s12 = smov [#allocation5]  }
  0x3c   : > { %449 = vst [vmem:[%s807_s20 + $0x2] sm:$0x3] %v215_v50  ;;  %v232_v61 = vmul.f32 0.2, %v231_v51  ;;  %v249_v62 = vadd.f32 %v248_v45, %v244_v52  ;;  %v275_v0 = vmul.f32 %v274_v58, %v273_v49  ;;  %v279_v2 = vmul.f32 %v470_v54, %v278_v59  ;;  %p577_p10 = scmp.ne.s32.totalorder %s853_s18, %s576_s5  ;;  %s580_s6 = sshll.u32 %s661_s12, 4  ;;  %s581_s6 = int_to_ptr.vmem [resolvable:$false] %s580_s6 }
  0x3d   : > { %v262_v1 = vadd.f32 %v261_v56, %v257_v53  ;;  %v283_v3 = vstv %s802_s15  ;;  %v292_v4 = vstv %s804_s16  ;;  %v296_v14 = vstv %s814_s24  ;;  %s582_s8 = scalar_lea.vmem %s581_s6, 512  ;;  %p583_p0 = scmp.lt.s32.totalorder %s853_s18, %s581_s6 }
  0x3e   : > { %v233_v7 = vmax.f32 %v231_v51, %v232_v61  ;;  %v250_v8 = vmul.f32 0.2, %v249_v62  ;;  %v284_v9 = vmul.f32 %v472_v55, %v283_v3  ;;  %v293_v10 = vmul.f32 %v292_v4, %v291_v60  ;;  %p578_p11 = pnand %p577_p10, %p719_p4  ;;  %p584_p1 = scmp.lt.s32.totalorder %s582_s8, %s576_s5 }
  0x3f   : > { %v267_v12 = vadd.f32 %v266_v63, %v262_v1  ;;  %v280_v13 = vadd.f32 %v279_v2, %v275_v0  ;;  %v301_v15 = vstv %s817_s23  ;;  %v297_v18 = vmul.f32 %v476_v5, %v296_v14 }
  0x40   : > { %455 = vst [vmem:[%s807_s20 + $0x4] sm:$0x3] %v233_v7  ;;  %v251_v17 = vmax.f32 %v249_v62, %v250_v8  ;;  %v302_v19 = vmul.f32 %v478_v6, %v301_v15  ;;  %v310_v20 = vstv %s822_s25  ;;  %v314_v25 = vstv %s824_s26  ;;  %p579_p13 = pneg %p578_p11  ;;  %p585_p2 = por %p584_p1, %p583_p0 }
  0x41   : > { %v268_v22 = vmul.f32 0.2, %v267_v12  ;;  %v285_v23 = vadd.f32 %v284_v9, %v280_v13  ;;  %v311_v24 = vmul.f32 %v310_v20, %v309_v11  ;;  %v298_v26 = vadd.f32 %v297_v18, %v293_v10 }
  0x42   : > { %461 = vst [vmem:[%s807_s20 + $0x6] sm:$0x3] %v251_v17  ;;  %v315_v27 = vmul.f32 %v482_v16, %v314_v25  ;;  %v319_v28 = vstv %s828_s27  ;;  %p586_p3 = pnand %p585_p2, %p579_p13 }
  0x43   : > { %v269_v29 = vmax.f32 %v267_v12, %v268_v22  ;;  %v286_v30 = vmul.f32 0.2, %v285_v23  ;;  %v320_v31 = vmul.f32 %v484_v21, %v319_v28  ;;  %v303_v32 = vadd.f32 %v302_v19, %v298_v26 }
  0x44   : > { %v316_v33 = vadd.f32 %v315_v27, %v311_v24 }
  0x45   : > { %467 = vst [vmem:[%s807_s20 + $0x8] sm:$0x3] %v269_v29  ;;  %v287_v34 = vmax.f32 %v285_v23, %v286_v30  ;;  %v304_v35 = vmul.f32 0.2, %v303_v32 }
  0x46   : > { %v321_v36 = vadd.f32 %v320_v31, %v316_v33 }
  0x47   : > { %473 = vst [vmem:[%s807_s20 + $0xa] sm:$0x3] %v287_v34  ;;  %v305_v37 = vmax.f32 %v303_v32, %v304_v35 }
  0x48   : > { %v322_v38 = vmul.f32 0.2, %v321_v36 }
  0x49   : > { %479 = vst [vmem:[%s807_s20 + $0xc] sm:$0x3] %v305_v37 }
  0x4a   : > { %v323_v39 = vmax.f32 %v321_v36, %v322_v38 }
  0x4c   : > { %485 = vst [vmem:[%s807_s20 + $0xe] sm:$0x3] %v323_v39 }
  0x4d   : > { %589 = shalt.err (!%p586_p3)
}
  0x4e   : > { %s590_s7 = scalar_lea.hbm %s859_s3, 256  ;;  %s594_s20 = scalar_lea.hbm %s912_s2, 512 }
  0x4f   : > { %p591_p5 = scmp.ne.s32.totalorder %s859_s3, %s590_s7  ;;  %p595_p9 = scmp.lt.u32.totalorder %s859_s3, %s912_s2 }
  0x50   : > { %p596_p12 = scmp.lt.u32.totalorder %s594_s20, %s590_s7  ;;  %p598_p11 = scmp.lt.u32.totalorder %s590_s7, %s859_s3 }
  0x51   : > { %p592_p6 = pnand %p591_p5, %p719_p4 }
  0x52   : > { %p597_p10 = por %p596_p12, %p595_p9 }
  0x53   : > { %p593_p7 = pneg %p592_p6 }
  0x54   : > { %p599_p13 = por %p598_p11, %p597_p10 }
  0x56   : > { %p600_p0 = pnand %p599_p13, %p593_p7 }
  0x58   : > { %603 = shalt.err (!%p600_p0)
}
  0x59   : > { %s662_s25 = smov 32   ;;  %s663_s26 = smov 2  }
  0x5a   : > { %497 = dma.vmem_to_hbm [thread:$0]  (%p719_p4), %s853_s18, 256, %s859_s3, %s864_s4, %s662_s25, %s662_s25, %s663_s26  }
  0x5b PF: > { %p509_p1 = scmp.ge.s32.totalorder %s658_s14, 2  ;;  %s356_s27 = sand.u32 1, %s638_s9  }
  0x5c   : > { %s357_s28 = scalar_lea.sflag [#allocation3], %s356_s27 }
  0x5d   : > { %p504_p2 = pnand %p509_p1, %p726_p8 }
  0x5f   : > { %633 = dma.done.wait (!%p504_p2), %s357_s28, 256  }
  0x60   : > { %635 = vsyncadd (!%p504_p2), %s357_s28, 4294967040  ;;  %s16_s14 = sadd.s32 1, %s658_s14   ;;  %s917_s9 = smov %s642_s10 }
  0x61   : > { %p13_p3 = scmp.ge.s32.totalorder %s16_s14, 4   ;;  %s918_s10 = smov %s646_s11 }
  0x62   : > { %s919_s11 = smov %s732_s22  ;;  %s920_s12 = smov %s654_s13 }
  0x63   : > { %s921_s13 = smov %s923_s17  ;;  %15 = sbr.rel (!%p13_p3) target bundleno = 5 (0x5), region = 77 }
  0x6a   :  { %362 = vsyncpa [#allocation3], 1 }
  0x6b   :  { %364 = vsyncpa [#allocation3 + $0x1], 1 }
  0x6c   :  { %365 = vsyncpa [#allocation4], 1 }
  0x6d   :  { %367 = vsyncpa [#allocation4 + $0x1], 1 }

</bundles_post_ra>
